<compile_context>
chip_gen: v7x
topology: tpu7x:2x2x1
jax: 0.10.0
libtpu: 0.0.40
codegen_flags: <defaults>
</compile_context>

<pallas_src>
import functools

import jax
import jax.numpy as jnp
from jax.experimental import pallas as pl
from jax.experimental.pallas import tpu as pltpu

_LANE = 128


def _round_up(x, m):
    return ((x + m - 1) // m) * m


def _device_kind():
    try:
        return jax.devices()[0].device_kind.lower()
    except Exception:
        return ""


def _vmem_limit_bytes():
    """Per-generation scoped-VMEM limit (~85% of physical, capped)."""
    kind = _device_kind()
    cap = 0
    try:
        cap = int(getattr(pltpu.get_tpu_info(), "vmem_capacity_bytes", 0) or 0)
    except Exception:
        cap = 0
    if cap <= 0 and kind:
        cap = (64 if "v7" in kind else 128) * 1024 * 1024
    if cap <= 0:
        return 48 * 1024 * 1024          # unknown chip: conservative, fits all gens
    limit = min(int(cap * 0.85), 110 * 1024 * 1024)
    if "v7" in kind:
        limit = min(limit, 56 * 1024 * 1024)   # 64 MiB/TC physical on v7x
    return limit


def _default_cout_tile(c_out_p):
    # v5e's MXU is 128 wide: N=256 tiles get split anyway while doubling VMEM and
    # result-FIFO pressure, so prefer 128 there; 256 on v6e/v7x.
    kind = _device_kind()
    is_v5e = ("v5e" in kind) or ("v5 lite" in kind) or ("v5lite" in kind)
    prefer = 128 if is_v5e else 256
    if c_out_p % prefer == 0:
        return min(prefer, c_out_p)
    return _LANE


def _conv_bn_act_kernel(x_ref, w_ref, bias_ref, o_ref, *scratch, kh, kw, c_in_p,
                        apply_act, w_resident, build_patch):
    # x_ref:  direct path: (TH, W, K)               -- lane-dense im2col'd/padded input
    #         band path:   (TH+KH-1, W+2p, Cin_pad) -- row band incl. halo rows
    # w_ref:  resident:    (NC, K, TC)  (constant block index -> DMA'd once)
    #         streamed:    (K, TC)
    # bias_ref: resident (NC, 1, TC) / streamed (1, TC), f32 (BN scale already
    #         folded into w; bias = beta - mean * scale)
    # o_ref:  (TH, W, TC)
    # scratch: (TH*W, K) im2col patch (band path only), persists across ci steps.
    th, w_out, tc = o_ref.shape
    k_total = kh * kw * c_in_p
    ci = pl.program_id(2)

    if build_patch:
        patch_ref = scratch[0]

        # The input band block is resident across the innermost Cout axis, so the
        # patch only has to be (re)built on the first Cout tile of each band.
        @pl.when(ci == 0)
        def _build_patch():
            for ikh in range(kh):
                for ikw in range(kw):
                    col = ikh * kw + ikw
                    patch_ref[:, pl.ds(col * c_in_p, c_in_p)] = (
                        x_ref[ikh:ikh + th, ikw:ikw + w_out, :]
                        .reshape(th * w_out, c_in_p))

        patch = patch_ref[...]
    else:
        patch = x_ref[...].reshape(th * w_out, k_total)

    if w_resident:
        wmat = w_ref[ci]            # (K, TC) slab for this Cout tile
        b = bias_ref[ci]            # (1, TC)
    else:
        wmat = w_ref[...]
        b = bias_ref[...]

    # Single MXU matmul over the full K = KH*KW*Cin_pad; f32 accumulation.
    y = jnp.dot(patch, wmat, preferred_element_type=jnp.float32) + b
    if apply_act:
        y = jnp.maximum(y, 0.0)
    o_ref[...] = y.reshape(th, w_out, tc).astype(o_ref.dtype)


def conv_bn_relu(x_nchw, weight_oihw, gamma, beta, running_mean, running_var, *,
                 stride=1, padding=1, eps=1e-5, act=True,
                 row_tile=None, cout_tile=None, weight_resident=None):
    """Forward of the PyTorch `Conv` module (inference BN). x_nchw: (N, Cin, H, W)."""
    n, c_in, h, w = x_nchw.shape
    c_out, c_in_w, kh, kw = weight_oihw.shape
    assert c_in_w == c_in
    if stride != 1:
        # TODO(synk): strided convs (YOLOv5 downsampling layers) need a strided
        # patch gather; not implemented in this Pallas path.
        raise NotImplementedError("kernel written for the default stride=1")
    if kh != 2 * padding + 1 or kw != 2 * padding + 1:
        raise NotImplementedError("kernel written for 'same' convs (k = 2p + 1)")

    compute_dtype = x_nchw.dtype          # bf16 in -> bf16 MXU operands; f32 -> f32
    dt_size = jnp.dtype(compute_dtype).itemsize
    c_out_p = _round_up(c_out, _LANE)

    # --- path selection ------------------------------------------------------
    # "direct": contraction dim presented to the kernel is already lane-dense
    # (1x1 conv, or small-Cin conv whose full KH*KW*Cin im2col is built once in
    # the wrapper and padded ONCE to 128).
    direct = (kh * kw == 1) or (kh * kw * c_in <= 384)

    # --- BN folding (inference): scale into weights, bias stays f32 -----------
    scale = gamma.astype(jnp.float32) / jnp.sqrt(running_var.astype(jnp.float32) + eps)
    bias = beta.astype(jnp.float32) - running_mean.astype(jnp.float32) * scale
    w_hwio = jnp.transpose(weight_oihw, (2, 3, 1, 0)).astype(jnp.float32)  # (kh,kw,ci,co)

    if direct:
        k_raw = kh * kw * c_in
        k_total = _round_up(k_raw, _LANE)
        c_in_p = k_total                  # kernel sees a "1x1" conv with Cin = K
        kh_k, kw_k = 1, 1
        w_flat = w_hwio.reshape(k_raw, c_out) * scale[None, :]
        w_flat = jnp.pad(w_flat, ((0, k_total - k_raw), (0, c_out_p - c_out)))
    else:
        c_in_p = _round_up(c_in, _LANE)
        k_total = kh * kw * c_in_p
        kh_k, kw_k = kh, kw
        w_pad = jnp.pad(w_hwio, ((0, 0), (0, 0), (0, c_in_p - c_in), (0, 0)))
        w_flat = w_pad.reshape(k_total, c_out) * scale[None, :]
        w_flat = jnp.pad(w_flat, ((0, 0), (0, c_out_p - c_out)))
    w_flat = w_flat.astype(compute_dtype)                      # (K, Cout_p)
    bias_row = jnp.pad(bias, (0, c_out_p - c_out)).reshape(1, c_out_p)  # f32

    # --- Cout tile -------------------------------------------------------------
    tc = _default_cout_tile(c_out_p) if cout_tile is None else min(int(cout_tile), c_out_p)
    assert tc % _LANE == 0 and c_out_p % tc == 0
    nc = c_out_p // tc

    # Weights resident in VMEM (DMA'd once for the whole grid) when small.
    w_bytes = k_total * c_out_p * dt_size
    w_res = (w_bytes <= 4 * 1024 * 1024) if weight_resident is None else bool(weight_resident)

    # --- VMEM-aware row-tile selection ------------------------------------------
    vmem_limit = _vmem_limit_bytes()
    wp_ = w if direct else w + 2 * padding

    def vmem_est(th_, tc_):
        band_h_ = th_ if direct else th_ + kh - 1
        k_in = k_total if direct else c_in_p
        band = band_h_ * wp_ * k_in * dt_size * 2             # double-buffered input
        out_b = th_ * w * tc_ * dt_size * 2                   # double-buffered output
        wgt = (w_bytes + c_out_p * 4) if w_res else (k_total * tc_ * dt_size + tc_ * 4) * 2
        patch = 0 if direct else th_ * w * k_total * dt_size  # im2col scratch
        tmp = th_ * w * tc_ * 4                               # f32 matmul result
        return band + out_b + wgt + patch + tmp

    budget = int(0.7 * vmem_limit)
    if row_tile is None:
        cands = [d for d in range(1, min(h, 64) + 1) if h % d == 0]
        th = cands[0]
        for d in cands:
            if vmem_est(d, tc) <= budget:
                th = d
        if vmem_est(th, tc) > budget and cout_tile is None and tc > _LANE:
            tc = _LANE
            nc = c_out_p // tc
            for d in cands:
                if vmem_est(d, tc) <= budget:
                    th = d
        # TODO(synk): add a W-tile grid axis for very wide images where even
        # row_tile=1 overflows the per-chip VMEM budget.
    else:
        th = int(row_tile)
    assert h % th == 0
    nh = h // th

    # --- input layout glue (plain JAX; fused by XLA) ----------------------------
    # TODO(synk): keep NHWC + padded Cout end-to-end across consecutive Conv
    # blocks (and DMA the halo bands in-kernel from a pl.ANY ref) to remove
    # these extra HBM passes.
    x_nhwc = jnp.transpose(x_nchw, (0, 2, 3, 1)).astype(compute_dtype)

    if direct:
        if kh * kw > 1:
            x_sp = jnp.pad(x_nhwc, ((0, 0), (padding, padding), (padding, padding), (0, 0)))
            cols = [x_sp[:, i:i + h, j:j + w, :] for i in range(kh) for j in range(kw)]
            x_in = jnp.concatenate(cols, axis=-1)              # (N, H, W, kh*kw*Cin)
        else:
            x_in = x_nhwc
        x_in = jnp.pad(x_in, ((0, 0), (0, 0), (0, 0), (0, k_total - x_in.shape[-1])))
        x_spec = pl.BlockSpec((None, th, w, k_total), lambda b, hi, ci: (b, hi, 0, 0))
        scratch_shapes = []
    else:
        band_h = th + kh - 1
        x_sp = jnp.pad(x_nhwc, ((0, 0), (padding, padding), (padding, padding),
                                (0, c_in_p - c_in)))
        # Overlapping row bands (wrapper-side halo): (N, NH, band_h, Wp, Cin_pad)
        x_in = jnp.stack([x_sp[:, i * th:i * th + band_h] for i in range(nh)], axis=1)
        x_spec = pl.BlockSpec((None, None, band_h, wp_, c_in_p),
                              lambda b, hi, ci: (b, hi, 0, 0, 0))
        scratch_shapes = [pltpu.VMEM((th * w, k_total), compute_dtype)]

    if w_res:
        w_arg = w_flat.reshape(k_total, nc, tc).transpose(1, 0, 2)   # (nc, K, tc)
        bias_arg = bias_row.reshape(nc, 1, tc)                       # (nc, 1, tc)
        w_spec = pl.BlockSpec((nc, k_total, tc), lambda b, hi, ci: (0, 0, 0))
        bias_spec = pl.BlockSpec((nc, 1, tc), lambda b, hi, ci: (0, 0, 0))
    else:
        w_arg = w_flat
        bias_arg = bias_row
        w_spec = pl.BlockSpec((k_total, tc), lambda b, hi, ci: (0, ci))
        bias_spec = pl.BlockSpec((1, tc), lambda b, hi, ci: (0, ci))

    kernel = functools.partial(
        _conv_bn_act_kernel, kh=kh_k, kw=kw_k, c_in_p=c_in_p,
        apply_act=bool(act), w_resident=w_res, build_patch=not direct)

    # ci carries the patch-scratch dependency in the band path -> "arbitrary".
    dim_sem = ("parallel", "parallel", ("parallel" if direct else "arbitrary"))

    out_nhwc = pl.pallas_call(
        kernel,
        out_shape=jax.ShapeDtypeStruct((n, h, w, c_out_p), compute_dtype),
        grid_spec=pltpu.PrefetchScalarGridSpec(
            num_scalar_prefetch=0,
            grid=(n, nh, nc),
            in_specs=[x_spec, w_spec, bias_spec],
            out_specs=pl.BlockSpec((None, th, w, tc), lambda b, hi, ci: (b, hi, 0, ci)),
            scratch_shapes=scratch_shapes,
        ),
        compiler_params=pltpu.CompilerParams(
            dimension_semantics=dim_sem,
            vmem_limit_bytes=vmem_limit,
        ),
    )(x_in, w_arg, bias_arg)

    out = out_nhwc[..., :c_out]                 # drop padded channels
    return jnp.transpose(out, (0, 3, 1, 2))     # NHWC -> NCHW


def _reference(x_nchw, weight_oihw, gamma, beta, running_mean, running_var,
               *, padding=1, eps=1e-5, act=True):
    y = jax.lax.conv_general_dilated(
        x_nchw.astype(jnp.float32), weight_oihw.astype(jnp.float32),
        window_strides=(1, 1), padding=[(padding, padding), (padding, padding)],
        dimension_numbers=("NCHW", "OIHW", "NCHW"))
    scale = (gamma / jnp.sqrt(running_var + eps)).reshape(1, -1, 1, 1)
    bias = (beta - running_mean * gamma / jnp.sqrt(running_var + eps)).reshape(1, -1, 1, 1)
    y = y * scale + bias
    return jnp.maximum(y, 0.0) if act else y


def _make_inputs(key, n, c_in, c_out, hgt, wid, k=3):
    k_x, k_w, k_g, k_b, k_m, k_v = jax.random.split(key, 6)
    x = jax.random.normal(k_x, (n, c_in, hgt, wid), dtype=jnp.float32)
    weight = jax.random.normal(k_w, (c_out, c_in, k, k), dtype=jnp.float32) * 0.1
    gamma = 1.0 + 0.1 * jax.random.normal(k_g, (c_out,), dtype=jnp.float32)
    beta = 0.1 * jax.random.normal(k_b, (c_out,), dtype=jnp.float32)
    mean = 0.1 * jax.random.normal(k_m, (c_out,), dtype=jnp.float32)
    var = jax.random.uniform(k_v, (c_out,), minval=0.5, maxval=1.5, dtype=jnp.float32)
    return x, weight, gamma, beta, mean, var


if __name__ == "__main__":
    key = jax.random.PRNGKey(0)
    k1, k2, k3 = jax.random.split(key, 3)

    # Case 1: small direct-path conv (Cin=4 -> K=36 padded once to 128), batch +
    # H tiling (row_tile=8 -> 2 bands), ReLU on, resident weights.
    x, wgt, g, b, m, v = _make_inputs(k1, n=2, c_in=4, c_out=8, hgt=16, wid=16)
    out = jax.block_until_ready(conv_bn_relu(x, wgt, g, b, m, v, act=True, row_tile=8))
    ref = _reference(x, wgt, g, b, m, v, act=True)
    assert out.shape == ref.shape, (out.shape, ref.shape)
    assert jnp.allclose(out, ref, atol=5e-4, rtol=5e-4), float(jnp.abs(out - ref).max())

    # Case 2: Cout tiling (Cout padded to 256, tile=128) with streamed
    # (non-resident) weights, act=False.
    x2, wgt2, g2, b2, m2, v2 = _make_inputs(k2, n=1, c_in=3, c_out=136, hgt=16, wid=16)
    out2 = jax.block_until_ready(conv_bn_relu(
        x2, wgt2, g2, b2, m2, v2, act=False, cout_tile=128, weight_resident=False))
    ref2 = _reference(x2, wgt2, g2, b2, m2, v2, act=False)
    assert out2.shape == ref2.shape, (out2.shape, ref2.shape)
    assert jnp.allclose(out2, ref2, atol=5e-4, rtol=5e-4), float(jnp.abs(out2 - ref2).max())

    # Case 3: large-Cin band path -- in-kernel im2col built once per band under
    # pl.when(ci == 0) and reused across 2 Cout tiles; resident weights.
    x3, wgt3, g3, b3, m3, v3 = _make_inputs(k3, n=1, c_in=128, c_out=256, hgt=16, wid=16)
    out3 = jax.block_until_ready(conv_bn_relu(
        x3, wgt3, g3, b3, m3, v3, act=True, cout_tile=128))
    ref3 = _reference(x3, wgt3, g3, b3, m3, v3, act=True)
    assert out3.shape == ref3.shape, (out3.shape, ref3.shape)
    assert jnp.allclose(out3, ref3, atol=5e-3, rtol=5e-3), float(jnp.abs(out3 - ref3).max())

    # Case 4: bf16 fast path (native bf16 MXU operands, f32 accumulation).
    xb = x.astype(jnp.bfloat16)
    outb = jax.block_until_ready(conv_bn_relu(xb, wgt, g, b, m, v, act=True))
    refb = _reference(xb.astype(jnp.float32),
                      wgt.astype(jnp.bfloat16).astype(jnp.float32), g, b, m, v, act=True)
    assert outb.dtype == jnp.bfloat16
    assert jnp.allclose(outb.astype(jnp.float32), refb, atol=6e-2, rtol=6e-2), \
        float(jnp.abs(outb.astype(jnp.float32) - refb).max())

    print("KERNEL_OK")
</pallas_src>

<mosaic_0001>
module attributes {stable_mosaic.version = 11 : i64} {
  func.func @_conv_bn_act_kernel(%arg0: i32, %arg1: i32, %arg2: i32, %arg3: memref<1x8x16x128xf32, #tpu.memory_space<vmem>>, %arg4: memref<1x128x128xf32, #tpu.memory_space<vmem>>, %arg5: memref<1x1x128xf32, #tpu.memory_space<vmem>>, %arg6: memref<1x8x16x128xf32, #tpu.memory_space<vmem>>) attributes {dimension_semantics = [#tpu.dimension_semantics<parallel>, #tpu.dimension_semantics<parallel>, #tpu.dimension_semantics<parallel>], iteration_bounds = array<i64: 2, 2, 1>, scalar_prefetch = 0 : i64, scratch_operands = 0 : i64, tpu.core_type = #tpu.core_type<tc>, window_params = [{transform_indices = @transform_0, window_bounds = array<i64: 1, 8, 16, 128>}, {pipeline_mode = #tpu.pipeline_mode<synchronous>, transform_indices = @transform_1, window_bounds = array<i64: 1, 128, 128>}, {pipeline_mode = #tpu.pipeline_mode<synchronous>, transform_indices = @transform_2, window_bounds = array<i64: 1, 1, 128>}, {transform_indices = @transform_3, window_bounds = array<i64: 1, 8, 16, 128>}]} {
    %c0 = arith.constant 0 : index
    %c0_0 = arith.constant 0 : index
    %c0_1 = arith.constant 0 : index
    %c0_2 = arith.constant 0 : index
    %0 = vector.load %arg3[%c0, %c0_0, %c0_1, %c0_2] : memref<1x8x16x128xf32, #tpu.memory_space<vmem>>, vector<1x8x16x128xf32>
    %1 = vector.shape_cast %0 : vector<1x8x16x128xf32> to vector<8x16x128xf32>
    %2 = vector.shape_cast %1 : vector<8x16x128xf32> to vector<128x128xf32>
    %3 = arith.index_cast %arg2 : i32 to index
    %c0_3 = arith.constant 0 : index
    %c0_4 = arith.constant 0 : index
    %4 = vector.load %arg4[%3, %c0_3, %c0_4] : memref<1x128x128xf32, #tpu.memory_space<vmem>>, vector<1x128x128xf32>
    %5 = vector.shape_cast %4 : vector<1x128x128xf32> to vector<128x128xf32>
    %6 = arith.index_cast %arg2 : i32 to index
    %c0_5 = arith.constant 0 : index
    %c0_6 = arith.constant 0 : index
    %7 = vector.load %arg5[%6, %c0_5, %c0_6] : memref<1x1x128xf32, #tpu.memory_space<vmem>>, vector<1x1x128xf32>
    %8 = vector.shape_cast %7 : vector<1x1x128xf32> to vector<1x128xf32>
    %cst = arith.constant dense<0.000000e+00> : vector<128x128xf32>
    %9 = tpu.matmul %2, %5, %cst {dimension_numbers = #tpu.dot_dimension_numbers<[1], [0], [0], [1], [0, 0, 1, 1], [], []>} : vector<128x128xf32>, vector<128x128xf32>, vector<128x128xf32> -> vector<128x128xf32>
    %10 = vector.broadcast %8 : vector<1x128xf32> to vector<128x128xf32>
    %11 = arith.addf %9, %10 : vector<128x128xf32>
    %cst_7 = arith.constant 0.000000e+00 : f32
    %12 = vector.broadcast %cst_7 : f32 to vector<128x128xf32>
    %13 = arith.maximumf %11, %12 : vector<128x128xf32>
    %14 = vector.shape_cast %13 : vector<128x128xf32> to vector<8x16x128xf32>
    %c0_8 = arith.constant 0 : index
    %c0_9 = arith.constant 0 : index
    %c0_10 = arith.constant 0 : index
    %c0_11 = arith.constant 0 : index
    %15 = vector.load %arg6[%c0_8, %c0_9, %c0_10, %c0_11] : memref<1x8x16x128xf32, #tpu.memory_space<vmem>>, vector<1x8x16x128xf32>
    %16 = vector.shape_cast %15 : vector<1x8x16x128xf32> to vector<8x16x128xf32>
    %17 = vector.shape_cast %14 : vector<8x16x128xf32> to vector<1x8x16x128xf32>
    tpu.vector_store %arg6[%c0_8, %c0_9, %c0_10, %c0_11], %17 {strides = array<i32>} : memref<1x8x16x128xf32, #tpu.memory_space<vmem>>, vector<1x8x16x128xf32>,
    return
  }
  func.func @transform_0(%arg0: i32, %arg1: i32, %arg2: i32) -> (i32, i32, i32, i32) {
    %c0_i32 = arith.constant 0 : i32
    %c0_i32_0 = arith.constant 0 : i32
    %c0_i32_1 = arith.constant 0 : i32
    return %arg0, %arg1, %c0_i32, %c0_i32_0 : i32, i32, i32, i32
  }
  func.func @transform_1(%arg0: i32, %arg1: i32, %arg2: i32) -> (i32, i32, i32) {
    %c0_i32 = arith.constant 0 : i32
    %c0_i32_0 = arith.constant 0 : i32
    %c0_i32_1 = arith.constant 0 : i32
    %c0_i32_2 = arith.constant 0 : i32
    return %c0_i32, %c0_i32_0, %c0_i32_1 : i32, i32, i32
  }
  func.func @transform_2(%arg0: i32, %arg1: i32, %arg2: i32) -> (i32, i32, i32) {
    %c0_i32 = arith.constant 0 : i32
    %c0_i32_0 = arith.constant 0 : i32
    %c0_i32_1 = arith.constant 0 : i32
    %c0_i32_2 = arith.constant 0 : i32
    return %c0_i32, %c0_i32_0, %c0_i32_1 : i32, i32, i32
  }
  func.func @transform_3(%arg0: i32, %arg1: i32, %arg2: i32) -> (i32, i32, i32, i32) {
    %c0_i32 = arith.constant 0 : i32
    %c0_i32_0 = arith.constant 0 : i32
    return %arg0, %arg1, %c0_i32, %arg2 : i32, i32, i32, i32
  }
}

</mosaic_0001>

<bundles_post_ra>
// kernel: tpu_custom_call.1
= control target key start
LH: loop header
LB: loop body
LE: loop exit
PB: predicated region body
PF: predicated region fallthrough
CT: control target
= control target key end

     0   :  { %s1406_s0 = inlined_call_operand.hbm [shape: f32[2,16,16,128], index: 0, kind: input, shape index: {}]   ;;  %s1407_s1 = inlined_call_operand.hbm [shape: f32[1,128,128], index: 1, kind: input, shape index: {}]   ;;  %s1408_s2 = inlined_call_operand.hbm [shape: f32[1,1,128], index: 2, kind: input, shape index: {}]   ;;  %s1409_s3 = inlined_call_operand.hbm [shape: f32[2,16,16,128], index: 3, kind: output, shape index: {}]  }
   0x1   :  { %1419 = sst [smem:[#allocation15_spill]] %s1407_s1 }
   0x2   :  { %1420 = sst [smem:[#allocation16_spill]] %s1408_s2 }
   0x3   :  { %8 = vsyncpa [#allocation3], 0 }
   0x4   :  { %10 = vsyncpa [#allocation3 + $0x1], 0 }
   0x5   :  { %11 = vsyncpa [#allocation6], 0 }
   0x6   :  { %12 = vsyncpa [#allocation4], 0 }
   0x7   :  { %14 = vsyncpa [#allocation4 + $0x1], 0  ;;  %s1082_s12 = smov 0   ;;  %s1084_s13 = smov 0  }
   0x8   :  { %s1086_s14 = smov 0   ;;  %s1088_s15 = smov 0  }
   0x9   :  { %s1090_s16 = smov 0   ;;  %s1092_s17 = smov 0  }
   0xa   :  { %s1094_s18 = smov 0   ;;  %s1096_s19 = smov 0  }
   0xb LB: > { %1421 = sst [smem:[#allocation12_spill]] %s1024_s12  ;;  %s599_s20 = sadd.s32 4294967295, %s1052_s19   ;;  %s1052_s19 = sphi %s1096_s19, %s20_s19   ;;  %s1048_s18 = sphi %s1094_s18, %s1451_s18   ;;  %s1044_s17 = sphi %s1092_s17, %s1450_s17   ;;  %s1040_s16 = sphi %s1090_s16, %s1449_s16   ;;  %s1036_s15 = sphi %s1088_s15, %s1448_s15   ;;  %s1032_s14 = sphi %s1086_s14, %s1447_s14   ;;  %s1028_s13 = sphi %s1084_s13, %s1446_s13   ;;  %s1024_s12 = sphi %s1082_s12, %s1445_s12  }
   0xc   : > { %s600_s21 = sadd.s32 4294967294, %s1052_s19   ;;  %p61_p0 = scmp.ne.s32.totalorder %s1028_s13, %s1024_s12 }
   0xd   : > { %p1126_p1 = scmp.eq.s32.totalorder %s599_s20, 0  ;;  %p1130_p2 = scmp.eq.s32.totalorder %s599_s20, 3 }
   0xe   : > { %p137_p3 = scmp.eq.s32.totalorder %s600_s21, 3  ;;  %p601_p5 = scmp.ge.s32.totalorder %s1052_s19, 1 }
   0xf   : > { %s1422_s22 = scalar_select %p1126_p1, 1, 0 }
  0x10   : > { %s1423_s23 = scalar_select %p1130_p2, 1, 0 }
  0x11   : > { %p1136_p4 = por %p1126_p1, %p61_p0  ;;  %p1141_p6 = por %p137_p3, %p61_p0 }
  0x12   : > { %p144_p7 = scmp.lt.s32.totalorder %s1052_s19, 5  ;;  %s1054_s27 = smov [#allocation5]  }
  0x13   : > { %s1424_s24 = scalar_select %p1136_p4, 1, 0 }
  0x14   : > { %s1425_s25 = scalar_select %p1141_p6, 1, 0 }
  0x15   : > { %p1146_p8 = pnand %p601_p5, %p144_p7  ;;  %s156_s28 = sshll.u32 %s1054_s27, 4  ;;  %s157_s28 = int_to_ptr.vmem [resolvable:$true] %s156_s28 }
  0x16   : > { %1426 = sst [smem:[#allocation13_spill]] %s1425_s25  ;;  %s1055_s30 = smov [#allocation7]  }
  0x17   : > { %s1427_s26 = scalar_select %p1146_p8, 1, 0 }
  0x18   : > { %p773_p9 = pneg %p1146_p8  ;;  %s170_s4 = sshll.u32 %s1055_s30, 4  ;;  %s1158_s4 = int_to_ptr.vmem [resolvable:$true] %s170_s4 }
  0x19   : > { %s1429_s1 = sld [smem:[#allocation15_spill]] }
  0x1a   : > { %p1154_p10 = pnand %p773_p9, %p1126_p1 }
  0x1c   : > { %p866_p12 = pneg %p1154_p10 }
  0x1f   : > { %s864_s7 = scalar_lea.hbm %s1429_s1, 2048 }
  0x20   : > { %p865_p11 = scmp.ne.s32.totalorder %s1429_s1, %s864_s7  ;;  %p871_p3 = scmp.lt.u32.totalorder %s864_s7, %s1429_s1 }
  0x22   : > { %p867_p13 = pnand %p866_p12, %p865_p11 }
  0x24   : > { %p868_p0 = pneg %p867_p13 }
  0x26   : > { %p873_p5 = pnand %p871_p3, %p868_p0 }
  0x28   : > { %876 = shalt.err (!%p873_p5)
}
  0x29   : > { %s877_s20 = scalar_lea.vmem %s157_s28, 2048  ;;  %p885_p1 = scmp.lt.s32.totalorder %s157_s28, %s157_s28 }
  0x2a   : > { %p878_p7 = scmp.ne.s32.totalorder %s157_s28, %s877_s20  ;;  %p886_p4 = scmp.lt.s32.totalorder %s877_s20, %s877_s20 }
  0x2c   : > { %p880_p9 = pnand %p878_p7, %p866_p12  ;;  %p887_p8 = por %p886_p4, %p885_p1 }
  0x2e   : > { %p881_p6 = pneg %p880_p9 }
  0x30   : > { %p888_p2 = pnand %p887_p8, %p881_p6 }
  0x32   : > { %891 = shalt.err (!%p888_p2)
}
  0x33   : > { %s1414_s21 = smov 128   ;;  %s1415_s27 = smov 8  }
  0x34   : > { %776 = dma.hbm_to_vmem [thread:$0]  (!%p1154_p10), %s1429_s1, 2048, %s157_s28, [#allocation6], %s1414_s21, %s1414_s21, %s1415_s27  }
  0x35   : > { %s1430_s2 = sld [smem:[#allocation16_spill]] }
  0x3b   : > { %s892_s8 = scalar_lea.hbm %s1430_s2, 16 }
  0x3c   : > { %p893_p1 = scmp.ne.s32.totalorder %s1430_s2, %s892_s8  ;;  %p899_p6 = scmp.lt.u32.totalorder %s892_s8, %s1430_s2 }
  0x3e   : > { %p895_p2 = pnand %p893_p1, %p866_p12 }
  0x40   : > { %p896_p4 = pneg %p895_p2 }
  0x42   : > { %p901_p8 = pnand %p899_p6, %p896_p4 }
  0x44   : > { %904 = shalt.err (!%p901_p8)
}
  0x45   : > { %s905_s28 = scalar_lea.vmem %s1158_s4, 16  ;;  %s912_s30 = scalar_lea.vmem %s1158_s4, 32 }
  0x46   : > { %p906_p11 = scmp.ne.s32.totalorder %s1158_s4, %s905_s28  ;;  %p913_p3 = scmp.lt.s32.totalorder %s1158_s4, %s1158_s4 }
  0x47   : > { %p914_p5 = scmp.lt.s32.totalorder %s912_s30, %s905_s28 }
  0x48   : > { %p908_p13 = pnand %p906_p11, %p866_p12 }
  0x49   : > { %p915_p7 = por %p914_p5, %p913_p3 }
  0x4a   : > { %p909_p0 = pneg %p908_p13 }
  0x4c   : > { %p916_p9 = pnand %p915_p7, %p909_p0 }
  0x4e   : > { %919 = shalt.err (!%p916_p9)
}
  0x4f   : > { %779 = dma.hbm_to_vmem [thread:$0]  (!%p1154_p10), %s1430_s2, 16, %s1158_s4, [#allocation6]  }
  0x50   : > { %s35_s7 = sadd.s32 1, %s1044_s17  ;;  %s39_s8 = sadd.s32 1, %s1048_s18 }
  0x51   : > { %p37_p12 = scmp.ge.s32.totalorder %s35_s7, 2  ;;  %s48_s29 = sadd.s32 1, %s1032_s14 }
  0x52   : > { %p55_p1 = scmp.ne.s32.totalorder %s1032_s14, %s1028_s13  ;;  %p56_p2 = scmp.eq.s32.totalorder %s1052_s19, 0 }
  0x53   : > { %s1453_s7 = smov (%p37_p12, %s35_s7), 0  ;;  %s1455_s8 = smov (!%p37_p12, %s39_s8), %s1048_s18 }
  0x54   : > { %1431 = sst [smem:[#allocation14_spill]] %s1453_s7  ;;  %s44_s9 = ssub.s32 %s1044_s17, %s1453_s7 }
  0x55   : > { %p1222_p4 = por %p56_p2, %p55_p1  ;;  %p41_p10 = scmp.ge.s32.totalorder %s1455_s8, 2 }
  0x56   : > { %p1433_p6 = scmp.ne.s32.totalorder %s1423_s23, 0  ;;  %p790_p11 = scmp.lt.s32.totalorder %s1052_s19, 4 }
  0x57   : > { %s181_s11 = sand.u32 1, %s1032_s14   ;;  %s1457_s8 = smov (%p41_p10, %s1455_s8), 0 }
  0x58   : > { %p1228_p8 = por %p1433_p6, %p55_p1  ;;  %s605_s20 = sshll.u32 %s181_s11, 7 }
  0x59   : > { %s43_s28 = ssub.s32 %s1048_s18, %s1457_s8  ;;  %s623_s5 = sshll.u32 %s1044_s17, 4 }
  0x5a   : > { %s45_s30 = sor.u32 %s44_s9, %s43_s28  ;;  %s608_s6 = sshll.u32 %s1048_s18, 5 }
  0x5b   : > { %p46_p13 = scmp.eq.s32.totalorder %s45_s30, 0  ;;  %s192_s21 = sadd.s32 %s623_s5, %s608_s6 }
  0x5c   : > { %s185_s27 = scalar_lea.vmem [#allocation2], %s605_s20  ;;  %s609_s2 = sshll.u32 %s192_s21, 7 }
  0x5d   : > { %s195_s23 = sshll.u32 %s185_s27, 4  ;;  %s1248_s12 = scalar_lea.hbm %s1406_s0, %s609_s2  ;;  %s1243_s23 = int_to_ptr.vmem [resolvable:$true] %s195_s23 }
  0x5e   : > { %s1241_s1 = scalar_select %p46_p13, %s1032_s14, %s48_s29  }
  0x5f   : > { %p1254_p0 = pnand %p790_p11, %p1222_p4  ;;  %s1258_s21 = scalar_lea.sflag [#allocation3], %s181_s11 }
  0x60   : > { %s920_s27 = scalar_lea.hbm %s1248_s12, 2048  ;;  %s925_s7 = scalar_lea.hbm %s1406_s0, 8192 }
  0x61   : > { %p921_p3 = scmp.ne.s32.totalorder %s1248_s12, %s920_s27  ;;  %p922_p5 = pneg %p1254_p0 }
  0x62   : > { %p926_p12 = scmp.lt.u32.totalorder %s1248_s12, %s1406_s0  ;;  %p927_p1 = scmp.lt.u32.totalorder %s925_s7, %s920_s27 }
  0x63   : > { %p923_p7 = pnand %p922_p5, %p921_p3  ;;  %p929_p4 = scmp.lt.u32.totalorder %s920_s27, %s1248_s12 }
  0x64   : > { %p928_p2 = por %p927_p1, %p926_p12 }
  0x65   : > { %p924_p9 = pneg %p923_p7 }
  0x66   : > { %p930_p10 = por %p929_p4, %p928_p2 }
  0x68   : > { %p931_p6 = pnand %p930_p10, %p924_p9 }
  0x6a   : > { %934 = shalt.err (!%p931_p6)
}
  0x6b   : > { %s935_s11 = scalar_lea.vmem %s1243_s23, 2048  ;;  %s1058_s20 = smov [#allocation2]  }
  0x6c   : > { %p936_p11 = scmp.ne.s32.totalorder %s1243_s23, %s935_s11  ;;  %s940_s28 = sshll.u32 %s1058_s20, 4  ;;  %s941_s28 = int_to_ptr.vmem [resolvable:$false] %s940_s28 }
  0x6d   : > { %s942_s30 = scalar_lea.vmem %s941_s28, 4096  ;;  %p943_p7 = scmp.lt.s32.totalorder %s1243_s23, %s941_s28 }
  0x6e   : > { %p938_p13 = pnand %p936_p11, %p922_p5  ;;  %p944_p12 = scmp.lt.s32.totalorder %s942_s30, %s935_s11 }
  0x70   : > { %p939_p3 = pneg %p938_p13  ;;  %p945_p1 = por %p944_p12, %p943_p7 }
  0x72   : > { %p946_p2 = pnand %p945_p1, %p939_p3 }
  0x74   : > { %949 = shalt.err (!%p946_p2)
}
  0x75   : > { %s1436_s5 = smov 8   ;;  %s1437_s6 = smov 128  }
  0x76   : > { %783 = dma.hbm_to_vmem [thread:$0]  (!%p1254_p0), %s1248_s12, 2048, %s1243_s23, %s1258_s21, %s1437_s6, %s1437_s6, %s1436_s5  }
  0x77   : > { %p1438_p5 = scmp.ne.s32.totalorder %s1427_s26, 0 }
  0x78   : > { %s1292_s27 = sand.u32 (!%p1438_p5), 1, %s1028_s13   ;;  %p1439_p9 = scmp.ne.s32.totalorder (!%p1438_p5), %s1424_s24, 0 }
  0x79   : > { %207 = sbr.rel (%p1438_p5) target bundleno = 411 (0x19b), region = 32  ;;  %s611_s2 = sshll.u32 (!%p1438_p5), %s1292_s27, 7 }
  0x7a   : > { %s210_s25 = scalar_lea.sflag (!%p1438_p5), [#allocation3], %s1292_s27  ;;  %s1298_s9 = scalar_lea.vmem (!%p1438_p5), [#allocation2], %s611_s2 }
  0x80   : > { %1011 = dma.done.wait (%p1439_p9), %s210_s25, 2048  }
  0x81   : > { %1013 = vsyncadd (%p1439_p9), %s210_s25, 4294965248  ;;  %p1440_p0 = scmp.ne.s32.totalorder %s1422_s22, 0 }
  0x83   : > { %1015 = dma.done.wait (%p1440_p0), [#allocation6], 2064  }
  0x84   : > { %1017 = vsyncadd (%p1440_p0), [#allocation6], 4294965232  ;;  %v264_v0 = vld [vmem:[#allocation5] sm:$0xff]  ;;  %v265_v1 = vld [vmem:[#allocation5 + $0x8] sm:$0xff]  ;;  %s1326_s12 = scalar_lea.vmem [#allocation8], %s611_s2  ;;  %s624_s22 = sshll.u32 %s1036_s15, 4 }
  0x85   : > { %v266_v2 = vld [vmem:[#allocation5 + $0x10] sm:$0xff]  ;;  %v713_v3 = vpack.c.bf16 %v265_v1, %v264_v0  ;;  %v267_v4 = vld [vmem:[#allocation5 + $0x18] sm:$0xff]  ;;  %v268_v6 = vld [vmem:[#allocation5 + $0x20] sm:$0xff]  ;;  %s619_s24 = sshll.u32 %s1040_s16, 5  ;;  %s483_s16 = sshll.u32 %s1326_s12, 4  ;;  %s1348_s16 = int_to_ptr.vmem [resolvable:$true] %s483_s16 }
  0x86   : > { %v717_v5 = vpack.c.bf16 %v267_v4, %v266_v2  ;;  %v269_v7 = vld [vmem:[#allocation5 + $0x28] sm:$0xff]  ;;  %v246_v9 = vld [vmem:[%s1298_s9] sm:$0xff]  ;;  %v270_v11 = vld [vmem:[#allocation5 + $0x30] sm:$0xff]  ;;  %s480_s26 = sadd.s32 %s624_s22, %s619_s24  ;;  %s466_s29 = scalar_lea.sflag [#allocation4], %s1292_s27 }
  0x87   : > { %714 = vmatprep.subr.bf16.mxu0 %v713_v3  ;;  %745 = vmatprep.subr.bf16.mxu1 %v713_v3  ;;  %v721_v8 = vpack.c.bf16 %v269_v7, %v268_v6  ;;  %v254_v10 = vld [vmem:[%s1298_s9 + $0x40] sm:$0xff]  ;;  %v271_v12 = vld [vmem:[#allocation5 + $0x38] sm:$0xff]  ;;  %v273_v15 = vld [vmem:[#allocation5 + $0x48] sm:$0xff]  ;;  %s620_s15 = sshll.u32 %s480_s26, 7  ;;  %s950_s10 = scalar_lea.vmem %s1348_s16, 2048 }
  0x88   : > { %716 = vmatpush3.bf16.msra.mxu0 %v713_v3  ;;  %753 = vmatpush3.bf16.msra.mxu1 %v713_v3  ;;  %v725_v13 = vpack.c.bf16 %v271_v12, %v270_v11  ;;  %v272_v14 = vld [vmem:[#allocation5 + $0x40] sm:$0xff]  ;;  %v274_v17 = vld [vmem:[#allocation5 + $0x50] sm:$0xff]  ;;  %v275_v18 = vld [vmem:[#allocation5 + $0x58] sm:$0xff]  ;;  %s1346_s7 = scalar_lea.hbm %s1409_s3, %s620_s15  ;;  %p951_p4 = scmp.ne.s32.totalorder %s1348_s16, %s950_s10 }
  0x89   : > { %718 = vmatprep.subr.bf16.mxu0 %v717_v5  ;;  %746 = vmatprep.subr.bf16.mxu1 %v717_v5  ;;  %v729_v16 = vpack.c.bf16 %v273_v15, %v272_v14  ;;  %v733_v19 = vpack.c.bf16 %v275_v18, %v274_v17  ;;  %v276_v20 = vld [vmem:[#allocation5 + $0x60] sm:$0xff]  ;;  %v277_v21 = vld [vmem:[#allocation5 + $0x68] sm:$0xff]  ;;  %v278_v23 = vld [vmem:[#allocation5 + $0x70] sm:$0xff]  ;;  %s1059_s11 = smov [#allocation8]  }
  0x8a   : > { %689 = vmatprep.mubr.f32.mxu0 %v246_v9  ;;  %701 = vmatprep.mubr.f32.mxu1 %v254_v10  ;;  %v737_v22 = vpack.c.bf16 %v277_v21, %v276_v20  ;;  %v279_v24 = vld [vmem:[#allocation5 + $0x78] sm:$0xff]  ;;  %v247_v26 = vld [vmem:[%s1298_s9 + $0x8] sm:$0xff]  ;;  %v248_v28 = vld [vmem:[%s1298_s9 + $0x10] sm:$0xff]  ;;  %p952_p10 = pnand %p951_p4, %p1228_p8  ;;  %s954_s20 = sshll.u32 %s1059_s11, 4  ;;  %s955_s20 = int_to_ptr.vmem [resolvable:$false] %s954_s20 }
  0x8b   : > { %v741_v25 = vpack.c.bf16 %v279_v24, %v278_v23  ;;  %v255_v27 = vld [vmem:[%s1298_s9 + $0x48] sm:$0xff]  ;;  %v256_v29 = vld [vmem:[%s1298_s9 + $0x50] sm:$0xff]  ;;  %v249_v30 = vld [vmem:[%s1298_s9 + $0x18] sm:$0xff]  ;;  %s956_s28 = scalar_lea.vmem %s955_s20, 4096  ;;  %p957_p11 = scmp.lt.s32.totalorder %s1348_s16, %s955_s20 }
  0x8c   : > { %720 = vmatpush3.bf16.msra.mxu0 %v717_v5  ;;  %754 = vmatpush3.bf16.msra.mxu1 %v717_v5  ;;  %v257_v31 = vld [vmem:[%s1298_s9 + $0x58] sm:$0xff]  ;;  %v250_v32 = vld [vmem:[%s1298_s9 + $0x20] sm:$0xff]  ;;  %v251_v34 = vld [vmem:[%s1298_s9 + $0x28] sm:$0xff]  ;;  %p953_p6 = pneg %p952_p10  ;;  %p958_p13 = scmp.lt.s32.totalorder %s956_s28, %s950_s10 }
  0x8d   : > { %722 = vmatprep.subr.bf16.mxu0 %v721_v8  ;;  %747 = vmatprep.subr.bf16.mxu1 %v721_v8  ;;  %v258_v33 = vld [vmem:[%s1298_s9 + $0x60] sm:$0xff]  ;;  %v259_v35 = vld [vmem:[%s1298_s9 + $0x68] sm:$0xff]  ;;  %v252_v36 = vld [vmem:[%s1298_s9 + $0x30] sm:$0xff] }
  0x8e   : > { %v260_v37 = vld [vmem:[%s1298_s9 + $0x70] sm:$0xff]  ;;  %v253_v38 = vld [vmem:[%s1298_s9 + $0x38] sm:$0xff]  ;;  %v615_v40 = vld [vmem:[#allocation7] ss:$0 sm:$0xff]  ;;  %p959_p3 = por %p958_p13, %p957_p11 }
  0x8f   : > { %v261_v39 = vld [vmem:[%s1298_s9 + $0x78] sm:$0xff] }
  0x90   : > { %724 = vmatpush3.bf16.msra.mxu0 %v721_v8  ;;  %755 = vmatpush3.bf16.msra.mxu1 %v721_v8  ;;  %p960_p7 = pnand %p959_p3, %p953_p6 }
  0x91   : > { %726 = vmatprep.subr.bf16.mxu0 %v725_v13  ;;  %748 = vmatprep.subr.bf16.mxu1 %v725_v13 }
  0x94   : > { %728 = vmatpush3.bf16.msra.mxu0 %v725_v13  ;;  %756 = vmatpush3.bf16.msra.mxu1 %v725_v13 }
  0x95   : > { %730 = vmatprep.subr.bf16.mxu0 %v729_v16  ;;  %749 = vmatprep.subr.bf16.mxu1 %v729_v16 }
  0x98   : > { %732 = vmatpush3.bf16.msra.mxu0 %v729_v16  ;;  %757 = vmatpush3.bf16.msra.mxu1 %v729_v16 }
  0x99   : > { %734 = vmatprep.subr.bf16.mxu0 %v733_v19  ;;  %750 = vmatprep.subr.bf16.mxu1 %v733_v19 }
  0x9c   : > { %736 = vmatpush3.bf16.msra.mxu0 %v733_v19  ;;  %758 = vmatpush3.bf16.msra.mxu1 %v733_v19 }
  0x9d   : > { %738 = vmatprep.subr.bf16.mxu0 %v737_v22  ;;  %751 = vmatprep.subr.bf16.mxu1 %v737_v22 }
  0xa0   : > { %740 = vmatpush3.bf16.msra.mxu0 %v737_v22  ;;  %759 = vmatpush3.bf16.msra.mxu1 %v737_v22 }
  0xa1   : > { %742 = vmatprep.subr.bf16.mxu0 %v741_v25  ;;  %752 = vmatprep.subr.bf16.mxu1 %v741_v25 }
  0xa4   : > { %744 = vmatpush3.bf16.msra.mxu0 %v741_v25  ;;  %760 = vmatpush3.bf16.msra.mxu1 %v741_v25 }
  0xa7   : > { %690 = vmatmul.mubr.f32.vlgmr.msra.gmra.mrb[0].mxu0 %v247_v26  ;;  %702 = vmatmul.mubr.f32.vlgmr.msra.gmra.mrb[0].mxu1 %v255_v27 }
  0xa8   : > { %692 = vmatprep.mubr.f32.mxu0 %v248_v28  ;;  %704 = vmatprep.mubr.f32.mxu1 %v256_v29 }
  0xab   : > { %693 = vmatmul.mubr.f32.gmra.mrb[2].mxu0 %v249_v30  ;;  %705 = vmatmul.mubr.f32.gmra.mrb[2].mxu1 %v257_v31 }
  0xac   : > { %695 = vmatprep.mubr.f32.mxu0 %v250_v32  ;;  %707 = vmatprep.mubr.f32.mxu1 %v258_v33 }
  0xaf   : > { %696 = vmatmul.mubr.f32.gmra.mrb[4].mxu0 %v251_v34  ;;  %708 = vmatmul.mubr.f32.gmra.mrb[4].mxu1 %v259_v35 }
  0xb0   : > { %698 = vmatprep.mubr.f32.mxu0 %v252_v36  ;;  %710 = vmatprep.mubr.f32.mxu1 %v260_v37 }
  0xb3   : > { %699 = vmatmul.mubr.f32.gmra.mrb[6].mxu0 %v253_v38  ;;  %711 = vmatmul.mubr.f32.gmra.mrb[6].mxu1 %v261_v39 }
 0x17a   : > { %v691_v41 = vpop.f32.mrb[0].mxu0  ;;  %v703_v42 = vpop.f32.mrb[0].mxu1 }
 0x17b   : > { %v360_v43 = vadd.f32 %v691_v41, %v615_v40  ;;  %v400_v44 = vadd.f32 %v703_v42, %v615_v40  ;;  %v354_v45 = vpop.f32.mrb[1].mxu0  ;;  %v394_v46 = vpop.f32.mrb[1].mxu1 }
 0x17c   : > { %v355_v47 = vadd.f32 %v615_v40, %v354_v45  ;;  %v395_v48 = vadd.f32 %v615_v40, %v394_v46 }
 0x17d   : > { %v434_v49 = vmax.f32 %v360_v43, 0.0  ;;  %v442_v50 = vmax.f32 %v400_v44, 0.0 }
 0x17e   : > { %v433_v51 = vmax.f32 %v355_v47, 0.0  ;;  %v441_v52 = vmax.f32 %v395_v48, 0.0  ;;  %v694_v53 = vpop.f32.mrb[2].mxu0  ;;  %v706_v54 = vpop.f32.mrb[2].mxu1 }
 0x17f   : > { %450 = vst [vmem:[%s1326_s12 + $0x8] sm:$0xff] %v434_v49  ;;  %458 = vst [vmem:[%s1326_s12 + $0x48] sm:$0xff] %v442_v50  ;;  %v370_v55 = vadd.f32 %v694_v53, %v615_v40  ;;  %v410_v56 = vadd.f32 %v706_v54, %v615_v40  ;;  %v364_v57 = vpop.f32.mrb[3].mxu0  ;;  %v404_v58 = vpop.f32.mrb[3].mxu1 }
 0x180   : > { %449 = vst [vmem:[%s1326_s12] sm:$0xff] %v433_v51  ;;  %457 = vst [vmem:[%s1326_s12 + $0x40] sm:$0xff] %v441_v52  ;;  %v365_v59 = vadd.f32 %v615_v40, %v364_v57  ;;  %v405_v60 = vadd.f32 %v615_v40, %v404_v58 }
 0x181   : > { %v436_v61 = vmax.f32 %v370_v55, 0.0  ;;  %v444_v62 = vmax.f32 %v410_v56, 0.0 }
 0x182   : > { %v435_v63 = vmax.f32 %v365_v59, 0.0  ;;  %v443_v0 = vmax.f32 %v405_v60, 0.0  ;;  %v697_v1 = vpop.f32.mrb[4].mxu0  ;;  %v709_v2 = vpop.f32.mrb[4].mxu1 }
 0x183   : > { %452 = vst [vmem:[%s1326_s12 + $0x18] sm:$0xff] %v436_v61  ;;  %460 = vst [vmem:[%s1326_s12 + $0x58] sm:$0xff] %v444_v62  ;;  %v380_v3 = vadd.f32 %v697_v1, %v615_v40  ;;  %v420_v4 = vadd.f32 %v709_v2, %v615_v40  ;;  %v374_v5 = vpop.f32.mrb[5].mxu0  ;;  %v414_v6 = vpop.f32.mrb[5].mxu1 }
 0x184   : > { %451 = vst [vmem:[%s1326_s12 + $0x10] sm:$0xff] %v435_v63  ;;  %459 = vst [vmem:[%s1326_s12 + $0x50] sm:$0xff] %v443_v0  ;;  %v375_v7 = vadd.f32 %v615_v40, %v374_v5  ;;  %v415_v8 = vadd.f32 %v615_v40, %v414_v6 }
 0x185   : > { %v438_v9 = vmax.f32 %v380_v3, 0.0  ;;  %v446_v10 = vmax.f32 %v420_v4, 0.0 }
 0x186   : > { %v437_v11 = vmax.f32 %v375_v7, 0.0  ;;  %v445_v12 = vmax.f32 %v415_v8, 0.0  ;;  %v700_v13 = vpop.f32.mrb[6].mxu0  ;;  %v712_v14 = vpop.f32.mrb[6].mxu1 }
 0x187   : > { %454 = vst [vmem:[%s1326_s12 + $0x28] sm:$0xff] %v438_v9  ;;  %462 = vst [vmem:[%s1326_s12 + $0x68] sm:$0xff] %v446_v10  ;;  %v390_v15 = vadd.f32 %v700_v13, %v615_v40  ;;  %v430_v16 = vadd.f32 %v712_v14, %v615_v40  ;;  %v384_v17 = vpop.f32.mrb[7].mxu0  ;;  %v424_v18 = vpop.f32.mrb[7].mxu1 }
 0x188   : > { %453 = vst [vmem:[%s1326_s12 + $0x20] sm:$0xff] %v437_v11  ;;  %461 = vst [vmem:[%s1326_s12 + $0x60] sm:$0xff] %v445_v12  ;;  %v385_v19 = vadd.f32 %v615_v40, %v384_v17  ;;  %v425_v20 = vadd.f32 %v615_v40, %v424_v18 }
 0x189   : > { %v440_v21 = vmax.f32 %v390_v15, 0.0  ;;  %v448_v22 = vmax.f32 %v430_v16, 0.0 }
 0x18a   : > { %v439_v23 = vmax.f32 %v385_v19, 0.0  ;;  %v447_v24 = vmax.f32 %v425_v20, 0.0 }
 0x18b   : > { %456 = vst [vmem:[%s1326_s12 + $0x38] sm:$0xff] %v440_v21  ;;  %464 = vst [vmem:[%s1326_s12 + $0x78] sm:$0xff] %v448_v22 }
 0x18c   : > { %455 = vst [vmem:[%s1326_s12 + $0x30] sm:$0xff] %v439_v23  ;;  %463 = vst [vmem:[%s1326_s12 + $0x70] sm:$0xff] %v447_v24 }
 0x18d   : > { %963 = shalt.err (!%p960_p7)
}
 0x18e   : > { %s964_s30 = scalar_lea.hbm %s1346_s7, 2048  ;;  %s968_s2 = scalar_lea.hbm %s1409_s3, 8192 }
 0x18f   : > { %p965_p12 = scmp.ne.s32.totalorder %s1346_s7, %s964_s30  ;;  %p969_p5 = scmp.lt.u32.totalorder %s1346_s7, %s1409_s3 }
 0x190   : > { %p970_p9 = scmp.lt.u32.totalorder %s968_s2, %s964_s30  ;;  %p972_p4 = scmp.lt.u32.totalorder %s964_s30, %s1346_s7 }
 0x191   : > { %p966_p1 = pnand %p965_p12, %p1228_p8 }
 0x192   : > { %p971_p0 = por %p970_p9, %p969_p5 }
 0x193   : > { %p967_p2 = pneg %p966_p1 }
 0x194   : > { %p973_p10 = por %p972_p4, %p971_p0 }
 0x196   : > { %p974_p6 = pnand %p973_p10, %p967_p2 }
 0x198   : > { %977 = shalt.err (!%p974_p6)
}
 0x199   : > { %s1060_s12 = smov 128   ;;  %s1061_s22 = smov 8  }
 0x19a   : > { %771 = dma.vmem_to_hbm [thread:$0]  (%p1228_p8), %s1348_s16, 2048, %s1346_s7, %s466_s29, %s1060_s12, %s1060_s12, %s1061_s22  }
 0x19b PF: > { %s1441_s24 = sld [smem:[#allocation12_spill]]  ;;  %s1442_s26 = sld [smem:[#allocation13_spill]] }
 0x19c   : > { %p793_p11 = scmp.ge.s32.totalorder %s1052_s19, 2 }
 0x1a1   : > { %s498_s15 = sand.u32 1, %s1441_s24   ;;  %p1443_p13 = scmp.ne.s32.totalorder %s1442_s26, 0 }
 0x1a2   : > { %s499_s23 = scalar_lea.sflag [#allocation4], %s498_s15 }
 0x1a3   : > { %p785_p3 = pnand %p793_p11, %p1443_p13 }
 0x1a5   : > { %1019 = dma.done.wait (!%p785_p3), %s499_s23, 2048  }
 0x1a6   : > { %1021 = vsyncadd (!%p785_p3), %s499_s23, 4294965248  ;;  %s20_s19 = sadd.s32 1, %s1052_s19   ;;  %s1444_s4 = sld [smem:[#allocation14_spill]] }
 0x1a7   : > { %p17_p7 = scmp.ge.s32.totalorder %s20_s19, 6   ;;  %s1445_s12 = smov %s1028_s13 }
 0x1a8   : > { %s1446_s13 = smov %s1032_s14  ;;  %s1447_s14 = smov %s1241_s1 }
 0x1a9   : > { %s1448_s15 = smov %s1044_s17  ;;  %s1449_s16 = smov %s1048_s18 }
 0x1aa   : > { %s1451_s18 = smov %s1457_s8  ;;  %19 = sbr.rel (!%p17_p7) target bundleno = 11 (0xb), region = 87 }
 0x1ac   : > { %s1450_s17 = smov %s1444_s4 }
 0x1b1   :  { %504 = vsyncpa [#allocation3], 1 }
 0x1b2   :  { %506 = vsyncpa [#allocation3 + $0x1], 1 }
 0x1b3   :  { %507 = vsyncpa [#allocation6], 1 }
 0x1b4   :  { %508 = vsyncpa [#allocation4], 1 }
 0x1b5   :  { %510 = vsyncpa [#allocation4 + $0x1], 1 }

</bundles_post_ra>
